<compile_context>
chip_gen: v5e
topology: v5e:2x2
jax: 0.10.0
libtpu: 0.0.40
codegen_flags: <defaults>
</compile_context>

<pallas_src>
import functools
import math

import jax
import jax.numpy as jnp
from jax.experimental import pallas as pl
from jax.experimental.pallas import tpu as pltpu


# ---------------------------------------------------------------------------
# Kernel bodies
# ---------------------------------------------------------------------------

def _roll_lane(x, shift: int):
    """Roll along the last (lane) axis by a static amount."""
    if shift == 0:
        return x
    axis = x.ndim - 1
    if x.shape[-1] % 128 == 0:
        # XLU lane rotation -- uses the vector-extended slot, not load/store.
        return pltpu.roll(x, shift, axis)
    # Unaligned lane dim: static slice + concat (safe fallback).
    return jnp.roll(x, shift, axis=axis)


def _shift_w_kernel(x_ref, o_ref, *, lane_shift: int):
    # Block is (th, W*C).  The H shift was already applied by the input
    # BlockSpec index_map (pure DMA), so only the W roll remains.
    o_ref[...] = _roll_lane(x_ref[...], lane_shift)


def _shift_hw_kernel(x_ref, o_ref, *, sub_shift: int, lane_shift: int):
    # Fallback: block is the full (H, W*C) image; do both rolls in-kernel.
    x = x_ref[...]
    if sub_shift:
        x = jnp.roll(x, sub_shift, axis=0)     # H roll (sublane axis)
    o_ref[...] = _roll_lane(x, lane_shift)     # W roll (lane axis)


# ---------------------------------------------------------------------------
# Wrapper
# ---------------------------------------------------------------------------

def _pick_h_tile(H: int, d_h: int, WC: int, itemsize: int,
                 target_bytes: int = 1 << 20):
    """Largest H tile th such that th | H, th | d_h (so the H shift moves whole
    blocks), th is sublane-aligned for the dtype, and the block stays small."""
    sub = {4: 8, 2: 16, 1: 32}.get(itemsize, 8)
    g = H if d_h == 0 else math.gcd(H, d_h)
    cands = [t for t in range(sub, g + 1, sub) if g % t == 0]
    if d_h == 0 and H not in cands:
        cands.append(H)  # full-dim block is always layout-legal
    if not cands:
        return None
    fitting = [t for t in cands if t * WC * itemsize <= target_bytes]
    return max(fitting) if fitting else min(cands)


def _vmem_limit(block_bytes: int) -> int:
    # in + out, double-buffered, plus slack; clamp to v7x physical VMEM.
    need = 4 * block_bytes + (1 << 20)
    return int(min(max(need, 8 << 20), 64 << 20))


def cyclic_shift(x: jax.Array, displacement: int,
                 *, target_block_bytes: int = 1 << 20) -> jax.Array:
    """Pallas equivalent of CyclicShift(displacement)(x), x of shape (B,H,W,C)."""
    B, H, W, C = x.shape
    d_h = displacement % H   # torch.roll semantics, incl. negative shifts
    d_w = displacement % W
    if d_h == 0 and d_w == 0:
        return x             # no-op shift: skip the HBM round trip entirely

    WC = W * C
    itemsize = x.dtype.itemsize
    lane_shift = d_w * C
    xf = x.reshape(B, H, WC)  # lane-dense last dim

    cost = pl.CostEstimate(flops=0, transcendentals=0,
                           bytes_accessed=2 * x.size * itemsize)

    th = _pick_h_tile(H, d_h, WC, itemsize, target_block_bytes)
    if th is not None and d_h % th == 0:
        # Fast path: H roll done by the input index_map (pure DMA),
        # W roll done on the XLU inside the kernel.
        n_hblk = H // th
        shift_blk = d_h // th
        block_bytes = th * WC * itemsize
        out = pl.pallas_call(
            functools.partial(_shift_w_kernel, lane_shift=lane_shift),
            out_shape=jax.ShapeDtypeStruct((B, H, WC), x.dtype),
            grid=(B, n_hblk),
            in_specs=[pl.BlockSpec(
                (None, th, WC),
                lambda b, h: (b, (h + n_hblk - shift_blk) % n_hblk, 0))],
            out_specs=pl.BlockSpec((None, th, WC), lambda b, h: (b, h, 0)),
            compiler_params=pltpu.CompilerParams(
                dimension_semantics=("parallel", "parallel"),
                vmem_limit_bytes=_vmem_limit(block_bytes)),
            cost_estimate=cost,
        )(xf)
    else:
        # Fallback: no sublane-aligned tile divides gcd(H, d_h); keep one full
        # (H, W*C) image per step and do both rolls in-kernel.
        block_bytes = H * WC * itemsize
        out = pl.pallas_call(
            functools.partial(_shift_hw_kernel,
                              sub_shift=d_h, lane_shift=lane_shift),
            out_shape=jax.ShapeDtypeStruct((B, H, WC), x.dtype),
            grid=(B,),
            in_specs=[pl.BlockSpec((None, H, WC), lambda b: (b, 0, 0))],
            out_specs=pl.BlockSpec((None, H, WC), lambda b: (b, 0, 0)),
            compiler_params=pltpu.CompilerParams(
                dimension_semantics=("parallel",),
                vmem_limit_bytes=_vmem_limit(block_bytes)),
            cost_estimate=cost,
        )(xf)

    return out.reshape(B, H, W, C)


# ---------------------------------------------------------------------------
# Demo / correctness check
# ---------------------------------------------------------------------------

if __name__ == "__main__":
    key = jax.random.PRNGKey(0)

    configs = [
        # (B, H, W, C), displacement
        ((2, 16, 16, 8), -8),   # fast path: DMA-encoded H shift + pltpu.roll (W*C = 128)
        ((2, 16, 16, 4), -4),   # fallback path: gcd(16,12)=4 < 8 -> in-kernel rolls
        ((2, 16, 16, 4), 16),   # no-op shift: wrapper short-circuit
    ]

    for idx, (shape, disp) in enumerate(configs):
        key, sub = jax.random.split(key)
        x = jax.random.normal(sub, shape, dtype=jnp.float32)

        out = jax.block_until_ready(cyclic_shift(x, disp))

        ref = jnp.roll(x, shift=(disp, disp), axis=(1, 2))
        assert out.shape == ref.shape and out.dtype == ref.dtype
        assert jnp.array_equal(out, ref), f"mismatch vs reference roll (config {idx})"

    print("KERNEL_OK")
</pallas_src>

<mosaic_0001>
module attributes {stable_mosaic.version = 11 : i64} {
  func.func @_shift_w_kernel(%arg0: i32, %arg1: i32, %arg2: memref<1x8x128xf32, #tpu.memory_space<vmem>>, %arg3: memref<1x8x128xf32, #tpu.memory_space<vmem>>) attributes {dimension_semantics = [#tpu.dimension_semantics<parallel>, #tpu.dimension_semantics<parallel>], iteration_bounds = array<i64: 2, 2>, scalar_prefetch = 0 : i64, scratch_operands = 0 : i64, tpu.core_type = #tpu.core_type<tc>, window_params = [{transform_indices = @transform_0, window_bounds = array<i64: 1, 8, 128>}, {transform_indices = @transform_1, window_bounds = array<i64: 1, 8, 128>}]} {
    %c0 = arith.constant 0 : index
    %c0_0 = arith.constant 0 : index
    %c0_1 = arith.constant 0 : index
    %0 = vector.load %arg2[%c0, %c0_0, %c0_1] : memref<1x8x128xf32, #tpu.memory_space<vmem>>, vector<1x8x128xf32>
    %1 = vector.shape_cast %0 : vector<1x8x128xf32> to vector<8x128xf32>
    %c64_i32 = arith.constant 64 : i32
    %2 = tpu.dynamic_rotate %1 by %c64_i32 dim 1 : vector<8x128xf32>, i32 -> vector<8x128xf32>
    %c0_2 = arith.constant 0 : index
    %c0_3 = arith.constant 0 : index
    %c0_4 = arith.constant 0 : index
    %3 = vector.load %arg3[%c0_2, %c0_3, %c0_4] : memref<1x8x128xf32, #tpu.memory_space<vmem>>, vector<1x8x128xf32>
    %4 = vector.shape_cast %3 : vector<1x8x128xf32> to vector<8x128xf32>
    %5 = vector.shape_cast %2 : vector<8x128xf32> to vector<1x8x128xf32>
    tpu.vector_store %arg3[%c0_2, %c0_3, %c0_4], %5 {strides = array<i32>} : memref<1x8x128xf32, #tpu.memory_space<vmem>>, vector<1x8x128xf32>,
    return
  }
  func.func @transform_0(%arg0: i32, %arg1: i32) -> (i32, i32, i32) {
    %c2_i32 = arith.constant 2 : i32
    %0 = arith.addi %arg1, %c2_i32 : i32
    %c1_i32 = arith.constant 1 : i32
    %1 = arith.subi %0, %c1_i32 : i32
    %c2_i32_0 = arith.constant 2 : i32
    %c0_i32 = arith.constant 0 : i32
    %2 = arith.cmpi eq, %c2_i32_0, %c0_i32 : i32
    %c1_i32_1 = arith.constant 1 : i32
    %3 = arith.select %2, %c1_i32_1, %c2_i32_0 : i32
    %4 = arith.remsi %1, %3 : i32
    %c0_i32_2 = arith.constant 0 : i32
    %5 = arith.cmpi ne, %4, %c0_i32_2 : i32
    %c0_i32_3 = arith.constant 0 : i32
    %6 = arith.cmpi slt, %4, %c0_i32_3 : i32
    %c0_i32_4 = arith.constant 0 : i32
    %7 = arith.cmpi slt, %3, %c0_i32_4 : i32
    %8 = arith.xori %6, %7 : i1
    %9 = arith.andi %8, %5 : i1
    %10 = arith.addi %4, %3 : i32
    %11 = arith.select %9, %10, %4 : i32
    %c0_i32_5 = arith.constant 0 : i32
    %c0_i32_6 = arith.constant 0 : i32
    return %arg0, %11, %c0_i32_5 : i32, i32, i32
  }
  func.func @transform_1(%arg0: i32, %arg1: i32) -> (i32, i32, i32) {
    %c0_i32 = arith.constant 0 : i32
    %c0_i32_0 = arith.constant 0 : i32
    return %arg0, %arg1, %c0_i32 : i32, i32, i32
  }
}

</mosaic_0001>

<bundles_post_ra>
// kernel: tpu_custom_call.1
= control target key start
LH: loop header
LB: loop body
LE: loop exit
PB: predicated region body
PF: predicated region fallthrough
CT: control target
= control target key end

     0   :  { %6 = vsyncpa [#allocation3], 0  ;;  %s803_s0 = inlined_call_operand.hbm [shape: f32[2,16,128], index: 0, kind: input, shape index: {}]   ;;  %s804_s1 = inlined_call_operand.hbm [shape: f32[2,16,128], index: 1, kind: output, shape index: {}]  }
   0x1   :  { %8 = vsyncpa [#allocation3 + $0x1], 0 }
   0x2   :  { %9 = vsyncpa [#allocation4], 0 }
   0x3   :  { %11 = vsyncpa [#allocation4 + $0x1], 0  ;;  %s603_s6 = smov 0   ;;  %s605_s7 = smov 0  }
   0x4   :  { %s607_s8 = smov 0   ;;  %s609_s9 = smov 0  }
   0x5   :  { %s611_s10 = smov 0   ;;  %s613_s11 = smov 0  }
   0x6   :  { %s615_s12 = smov 0   ;;  %s617_s13 = smov 0  }
   0x7   :  { %s619_s14 = smov 0   ;;  %s621_s15 = smov 0  }
   0x8   :  { %s623_s16 = smov 0  }
   0x9 LB: > { %808 = sst [smem:[#allocation8_spill]] %s586_s15  ;;  %s311_s17 = sadd.s32 4294967295, %s590_s16   ;;  %s590_s16 = sphi %s623_s16, %s17_s16   ;;  %s586_s15 = sphi %s621_s15, %s818_s15   ;;  %s582_s14 = sphi %s619_s14, %s826_s14   ;;  %s578_s13 = sphi %s617_s13, %s816_s13   ;;  %s574_s12 = sphi %s615_s12, %s825_s12   ;;  %s570_s11 = sphi %s613_s11, %s824_s11   ;;  %s566_s10 = sphi %s611_s10, %s823_s10   ;;  %s562_s9 = sphi %s609_s9, %s822_s9   ;;  %s558_s8 = sphi %s607_s8, %s821_s8   ;;  %s554_s7 = sphi %s605_s7, %s820_s7   ;;  %s550_s6 = sphi %s603_s6, %s819_s6  }
   0xa   : > { %s312_s18 = sadd.s32 4294967294, %s590_s16   ;;  %s26_s19 = sadd.s32 1, %s582_s14 }
   0xb   : > { %s29_s20 = sadd.s32 1, %s586_s15  ;;  %p27_p0 = scmp.ge.s32.totalorder %s26_s19, 2 }
   0xc   : > { %s35_s21 = ssub.s32 0, %s26_s19  ;;  %s64_s22 = sadd.s32 1, %s570_s11 }
   0xd   : > { %s663_s23 = scalar_select %p27_p0, 0, %s26_s19  }
   0xe   : > { %s828_s20 = smov (!%p27_p0, %s29_s20), %s586_s15  ;;  %s313_s24 = smin.u32 %s35_s21, %s26_s19 }
   0xf   : > { %809 = sst [smem:[#allocation9_spill]] %s663_s23  ;;  %s46_s25 = sadd.s32 1, %s663_s23 }
  0x10   : > { %p31_p1 = scmp.ge.s32.totalorder %s828_s20, 2  ;;  %s37_s26 = sand.u32 1, %s313_s24  }
  0x11   : > { %s48_s27 = ssub.s32 0, %s46_s25  ;;  %p315_p2 = scmp.lt.s32.totalorder %s37_s26, 0 }
  0x12   : > { %s830_s20 = smov (%p31_p1, %s828_s20), 0  ;;  %s44_s29 = sadd.s32 2, %s37_s26 }
  0x13   : > { %810 = sst [smem:[#allocation10_spill]] %s830_s20  ;;  %s59_s28 = ssub.s32 %s586_s15, %s830_s20 }
  0x14   : > { %s316_s30 = smin.u32 %s48_s27, %s46_s25  ;;  %p71_p3 = scmp.ne.s32.totalorder %s570_s11, %s566_s10 }
  0x15   : > { %s832_s29 = smov (!%p315_p2, %s44_s29), %s37_s26  ;;  %s50_s2 = sand.u32 1, %s316_s30  }
  0x16   : > { %p72_p4 = scmp.eq.s32.totalorder %s590_s16, 0  ;;  %p77_p5 = scmp.ne.s32.totalorder %s566_s10, %s562_s9 }
  0x17   : > { %p78_p7 = scmp.eq.s32.totalorder %s311_s17, 0  ;;  %p318_p8 = scmp.lt.s32.totalorder %s50_s2, 0 }
  0x18   : > { %p678_p6 = por %p72_p4, %p71_p3  ;;  %s57_s4 = sadd.s32 2, %s50_s2 }
  0x19   : > { %p684_p9 = por %p78_p7, %p77_p5  ;;  %s88_s9 = ssub.s32 %s582_s14, %s663_s23 }
  0x1a   : > { %s834_s4 = smov (!%p318_p8, %s57_s4), %s50_s2  ;;  %s89_s19 = sor.u32 %s88_s9, %s59_s28 }
  0x1b   : > { %s92_s21 = sadd.s32 1, %s558_s8  ;;  %s60_s24 = ssub.s32 %s832_s29, %s834_s4 }
  0x1c   : > { %p90_p10 = scmp.eq.s32.totalorder %s89_s19, 0  ;;  %s61_s25 = sor.u32 %s60_s24, %s59_s28 }
  0x1d   : > { %p102_p11 = scmp.ne.s32.totalorder %s558_s8, %s554_s7  ;;  %p62_p12 = scmp.eq.s32.totalorder %s61_s25, 0 }
  0x1e   : > { %p103_p13 = scmp.eq.s32.totalorder %s311_s17, 3  ;;  %p108_p1 = scmp.ne.s32.totalorder %s554_s7, %s550_s6 }
  0x1f   : > { %s697_s26 = scalar_select %p90_p10, %s558_s8, %s92_s21  }
  0x20   : > { %s702_s27 = scalar_select %p62_p12, %s570_s11, %s64_s22  }
  0x21   : > { %p704_p0 = por %p103_p13, %p102_p11  ;;  %p109_p2 = scmp.eq.s32.totalorder %s312_s18, 3 }
  0x22   : > { %p347_p3 = scmp.lt.s32.totalorder %s590_s16, 4  ;;  %s129_s28 = sand.u32 1, %s570_s11  }
  0x23   : > { %p714_p4 = por %p109_p2, %p108_p1  ;;  %s321_s17 = sshll.u32 %s129_s28, 3 }
  0x24   : > { %s325_s4 = sshll.u32 %s586_s15, 1  ;;  %s133_s19 = scalar_lea.vmem [#allocation2], %s321_s17 }
  0x25   : > { %s150_s22 = sadd.s32 %s325_s4, %s832_s29  ;;  %s156_s21 = sshll.u32 %s133_s19, 4  ;;  %s157_s21 = int_to_ptr.vmem [resolvable:$true] %s156_s21 }
  0x26   : > { %s326_s9 = sshll.u32 %s150_s22, 3  ;;  %p725_p5 = pnand %p347_p3, %p678_p6 }
  0x27   : > { %s152_s20 = scalar_lea.hbm %s803_s0, %s326_s9  ;;  %p327_p7 = scmp.ge.s32.totalorder %s590_s16, 1 }
  0x28   : > { %s154_s23 = sshll.u32 %s152_s20, 4  ;;  %p161_p8 = scmp.lt.s32.totalorder %s590_s16, 5  ;;  %s155_s23 = int_to_ptr.hbm [resolvable:$true] %s154_s23 }
  0x29   : > { %s130_s15 = scalar_lea.sflag [#allocation3], %s129_s28  ;;  %s438_s29 = sshra.s32 %s155_s23, 4  ;;  %s439_s29 = int_to_ptr.hbm [resolvable:$true] %s438_s29 }
  0x2a   : > { %s440_s17 = scalar_lea.hbm %s439_s29, 8  ;;  %p442_p11 = pneg %p725_p5 }
  0x2b   : > { %p441_p10 = scmp.ne.s32.totalorder %s439_s29, %s440_s17  ;;  %s445_s3 = scalar_lea.hbm %s803_s0, 32 }
  0x2c   : > { %p446_p6 = scmp.lt.s32.totalorder %s439_s29, %s803_s0  ;;  %p447_p1 = scmp.lt.s32.totalorder %s445_s3, %s440_s17 }
  0x2d   : > { %p443_p12 = pnand %p442_p11, %p441_p10 }
  0x2e   : > { %p448_p2 = por %p447_p1, %p446_p6 }
  0x2f   : > { %p444_p13 = pneg %p443_p12 }
  0x31   : > { %p449_p3 = pnand %p448_p2, %p444_p13 }
  0x33   : > { %452 = shalt.err (!%p449_p3)
}
  0x34   : > { %342 = dma.hbm_to_vmem [thread:$0]  (!%p725_p5), %s155_s23, 128, %s157_s21, %s130_s15  }
  0x35   : > { %p162_p10 = pnand %p327_p7, %p161_p8 }
  0x36   : > { %s167_s28 = sand.u32 (!%p162_p10), 1, %s566_s10  }
  0x37   : > { %165 = sbr.rel (%p162_p10) target bundleno = 180 (0xb4), region = 24  ;;  %s328_s19 = sshll.u32 (!%p162_p10), %s167_s28, 3 }
  0x38   : > { %s168_s24 = scalar_lea.sflag (!%p162_p10), [#allocation3], %s167_s28  ;;  %s171_s25 = scalar_lea.vmem (!%p162_p10), [#allocation2], %s328_s19 }
  0x3c   : > { %541 = dma.done.wait (%p684_p9), %s168_s24, 128  }
  0x3d   : > { %543 = vsyncadd (%p684_p9), %s168_s24, 4294967168  ;;  %v204_v0 = vld [vmem:[%s171_s25] sm:$0xff]  ;;  %s592_s15 = smov 64   ;;  %s331_s23 = sshll.u32 %s578_s13, 1 }
  0x3e   : > { %205 = vrot.lane.b32.xlu0 %v204_v0, %s592_s15  ;;  %s188_s21 = sand.u32 1, %s554_s7   ;;  %s219_s18 = sadd.s32 %s574_s12, %s331_s23 }
  0x3f   : > { %s329_s29 = sshll.u32 %s188_s21, 3  ;;  %s332_s17 = sshll.u32 %s219_s18, 3 }
  0x40   : > { %s221_s3 = scalar_lea.hbm %s804_s1, %s332_s17  ;;  %s190_s22 = scalar_lea.vmem [#allocation5], %s329_s29 }
  0x41   : > { %s223_s9 = sshll.u32 %s190_s22, 4  ;;  %s225_s5 = sshll.u32 %s221_s3, 4  ;;  %s224_s9 = int_to_ptr.vmem [resolvable:$true] %s223_s9  ;;  %s226_s5 = int_to_ptr.hbm [resolvable:$true] %s225_s5 }
  0x42   : > { %s209_s28 = scalar_lea.sflag [#allocation4], %s188_s21  ;;  %s482_s19 = sshra.s32 %s226_s5, 4  ;;  %s483_s19 = int_to_ptr.hbm [resolvable:$true] %s482_s19 }
  0x43   : > { %s484_s13 = scalar_lea.hbm %s483_s19, 8  ;;  %s488_s25 = scalar_lea.hbm %s804_s1, 32 }
  0x44   : > { %p485_p9 = scmp.ne.s32.totalorder %s483_s19, %s484_s13  ;;  %p489_p8 = scmp.lt.s32.totalorder %s483_s19, %s804_s1 }
  0x45   : > { %p490_p11 = scmp.lt.s32.totalorder %s488_s25, %s484_s13 }
  0x46   : > { %p486_p5 = pnand %p485_p9, %p704_p0 }
  0x47   : > { %p491_p12 = por %p490_p11, %p489_p8 }
  0x48   : > { %p487_p7 = pneg %p486_p5 }
  0x4a   : > { %p492_p13 = pnand %p491_p12, %p487_p7 }
  0xb0   : > { %v206_v1 = vpop.permute.xlu0 %205 }
  0xb1   : > { %207 = vst [vmem:[%s190_s22] sm:$0xff] %v206_v1 }
  0xb2   : > { %495 = shalt.err (!%p492_p13)
}
  0xb3   : > { %337 = dma.vmem_to_hbm [thread:$0]  (%p704_p0), %s224_s9, 128, %s226_s5, %s209_s28  }
  0xb4 PF: > { %p348_p6 = scmp.ge.s32.totalorder %s590_s16, 2  ;;  %s237_s21 = sand.u32 1, %s550_s6  }
  0xb5   : > { %s238_s18 = scalar_lea.sflag [#allocation4], %s237_s21 }
  0xb6   : > { %p344_p1 = pnand %p348_p6, %p714_p4 }
  0xb8   : > { %p345_p2 = pneg %p344_p1 }
  0xba   : > { %545 = dma.done.wait (%p345_p2), %s238_s18, 128  }
  0xbb   : > { %547 = vsyncadd (%p345_p2), %s238_s18, 4294967168  ;;  %s17_s16 = sadd.s32 1, %s590_s16   ;;  %s816_s13 = sld [smem:[#allocation8_spill]] }
  0xbc   : > { %p14_p3 = scmp.ge.s32.totalorder %s17_s16, 6   ;;  %s817_s30 = sld [smem:[#allocation9_spill]] }
  0xbd   : > { %s818_s15 = sld [smem:[#allocation10_spill]]  ;;  %s819_s6 = smov %s554_s7 }
  0xbe   : > { %s820_s7 = smov %s558_s8  ;;  %s821_s8 = smov %s697_s26 }
  0xbf   : > { %s822_s9 = smov %s566_s10  ;;  %s823_s10 = smov %s570_s11 }
  0xc0   : > { %s824_s11 = smov %s702_s27  ;;  %s825_s12 = smov %s582_s14 }
  0xc1   :  { %16 = sbr.rel (!%p14_p3) target bundleno = 9 (0x9), region = 69 }
  0xc2   : > { %s826_s14 = smov %s817_s30 }
  0xc6   :  { %244 = vsyncpa [#allocation3], 1 }
  0xc7   :  { %246 = vsyncpa [#allocation3 + $0x1], 1 }
  0xc8   :  { %247 = vsyncpa [#allocation4], 1 }
  0xc9   :  { %249 = vsyncpa [#allocation4 + $0x1], 1 }

</bundles_post_ra>
